<compile_context>
chip_gen: v7x
topology: tpu7x:2x2x1
jax: 0.10.0
libtpu: 0.0.40
codegen_flags: <defaults>
</compile_context>

<pallas_src>
import functools

import jax
import jax.numpy as jnp
from jax.experimental import pallas as pl
from jax.experimental.pallas import tpu as pltpu


def _round_up(a: int, b: int) -> int:
    return ((a + b - 1) // b) * b


def _linear_kernel(*refs, bn: bool):
    """Grid step (i, j, k): optionally normalize the K-tile of x (fused
    BatchNorm1d, affine=False), and accumulate x_norm @ W^T[k, j] into the
    resident output block.  The bias initializes the block at k == 0."""
    if bn:
        x_ref, mean_ref, invstd_ref, w_ref, b_ref, o_ref = refs
    else:
        x_ref, w_ref, b_ref, o_ref = refs

    k = pl.program_id(2)

    @pl.when(k == 0)
    def _():
        # Initialize the resident output block with the (broadcast) bias.
        o_ref[...] = jnp.broadcast_to(b_ref[...], o_ref.shape)

    x = x_ref[...]
    if bn:
        # Fused BatchNorm1d (affine=False): (x - mean) * inv_std, row-broadcast.
        x = (x - mean_ref[...]) * invstd_ref[...]

    # bf16 operands on the MXU, f32 accumulation into the resident out block.
    o_ref[...] += jnp.dot(
        x.astype(w_ref.dtype), w_ref[...],
        preferred_element_type=jnp.float32,
    )


def linear_classifier_forward(
    x, weight, bias, *, bn_head: bool = False, eps: float = 1e-6,
    tm_cap: int = 256, tn: int = 1024, tk: int = 1024,
    stream_weights_bf16: bool = True,
):
    """Pallas implementation of LinearClassifier.forward.

    x:      (B, C, H, W) or (B, dim)  float32
    weight: (num_labels, dim)         float32   (PyTorch nn.Linear layout)
    bias:   (num_labels,)             float32
    """
    B = x.shape[0]
    x2d = x.reshape(B, -1).astype(jnp.float32)   # glue: x.view(B, -1)
    dim = x2d.shape[1]
    num_labels = weight.shape[0]
    assert weight.shape[1] == dim

    # ---- tile sizes (multiples of (8, 128), clamped to the padded extents) ----
    tk_eff = min(tk, _round_up(dim, 128))
    tn_eff = min(tn, _round_up(num_labels, 128))
    tm_eff = min(tm_cap, _round_up(B, 8))
    dim_pad = _round_up(dim, tk_eff)
    L_pad = _round_up(num_labels, tn_eff)
    B_pad = _round_up(B, tm_eff)

    w_dtype = jnp.bfloat16 if stream_weights_bf16 else jnp.float32

    # ---- BN batch statistics (single fused pass, affine=False, biased var) ----
    # TODO(synk): eval-mode BatchNorm1d would use running stats; batch stats
    # here match train-mode behaviour (the linear-probe training setting).
    if bn_head:
        mean = jnp.mean(x2d, axis=0, keepdims=True)                     # (1, dim)
        mean_sq = jnp.mean(x2d * x2d, axis=0, keepdims=True)            # (1, dim)
        var = jnp.maximum(mean_sq - mean * mean, 0.0)                   # biased
        inv_std = 1.0 / jnp.sqrt(var + eps)                             # (1, dim)
        mean = jnp.pad(mean, ((0, 0), (0, dim_pad - dim)))
        inv_std = jnp.pad(inv_std, ((0, 0), (0, dim_pad - dim)),
                          constant_values=1.0)

    # ---- pad operands to tile multiples (zeros cannot change the result) ----
    x_pad = jnp.pad(x2d, ((0, B_pad - B), (0, dim_pad - dim)))
    w_t = jnp.pad(weight.T.astype(w_dtype),
                  ((0, dim_pad - dim), (0, L_pad - num_labels)))        # (dim_pad, L_pad)
    b2d = jnp.pad(bias.astype(jnp.float32).reshape(1, num_labels),
                  ((0, 0), (0, L_pad - num_labels)))                    # (1, L_pad)

    grid = (B_pad // tm_eff, L_pad // tn_eff, dim_pad // tk_eff)

    # ---- BlockSpecs (BN refs included only when bn_head) ----
    in_specs = [pl.BlockSpec((tm_eff, tk_eff), lambda i, j, k: (i, k))]   # x
    operands = [x_pad]
    if bn_head:
        in_specs += [
            pl.BlockSpec((1, tk_eff), lambda i, j, k: (0, k)),            # mean
            pl.BlockSpec((1, tk_eff), lambda i, j, k: (0, k)),            # inv_std
        ]
        operands += [mean, inv_std]
    in_specs += [
        pl.BlockSpec((tk_eff, tn_eff), lambda i, j, k: (k, j)),           # weight^T
        pl.BlockSpec((1, tn_eff), lambda i, j, k: (0, j)),                # bias
    ]
    operands += [w_t, b2d]

    # ---- VMEM budget: double-buffered tiles + headroom, safe on 64 MiB v7x ----
    bytes_w = tk_eff * tn_eff * (2 if stream_weights_bf16 else 4)
    bytes_x = tm_eff * tk_eff * 4
    bytes_o = tm_eff * tn_eff * 4
    bytes_small = 2 * tk_eff * 4 + tn_eff * 4
    footprint = 2 * (bytes_w + bytes_x + bytes_o + bytes_small)
    vmem_limit = int(min(max(footprint + (8 << 20), 32 << 20), 48 << 20))

    out = pl.pallas_call(
        functools.partial(_linear_kernel, bn=bn_head),
        out_shape=jax.ShapeDtypeStruct((B_pad, L_pad), jnp.float32),
        grid_spec=pltpu.PrefetchScalarGridSpec(
            num_scalar_prefetch=0,
            grid=grid,
            in_specs=in_specs,
            out_specs=pl.BlockSpec((tm_eff, tn_eff), lambda i, j, k: (i, j)),
        ),
        compiler_params=pltpu.CompilerParams(
            dimension_semantics=("parallel", "parallel", "arbitrary"),
            vmem_limit_bytes=vmem_limit,
        ),
    )(*operands)

    return out[:B, :num_labels]


def _reference_forward(x, weight, bias, *, bn_head: bool, eps: float = 1e-6):
    x2d = x.reshape(x.shape[0], -1)
    if bn_head:
        mean = jnp.mean(x2d, axis=0, keepdims=True)
        var = jnp.mean((x2d - mean) ** 2, axis=0, keepdims=True)
        x2d = (x2d - mean) / jnp.sqrt(var + eps)
    return x2d @ weight.T + bias


if __name__ == "__main__":
    key = jax.random.PRNGKey(0)
    k_x, k_w = jax.random.split(key)

    # Small shapes: frozen features (B, C, H, W) -> dim = C*H*W.
    # num_labels=1000 matches the module default and exercises the padding path.
    B, C, H, W = 2, 4, 8, 8
    dim = C * H * W                 # 256
    num_labels = 1000

    x = jax.random.normal(k_x, (B, C, H, W), dtype=jnp.float32)

    # Deterministic parameter init matching the module's __init__:
    #   weight ~ Normal(0, 0.01), bias = 0.
    weight = 0.01 * jax.random.normal(k_w, (num_labels, dim), dtype=jnp.float32)
    bias = jnp.zeros((num_labels,), dtype=jnp.float32)

    # bn_head=True path (BatchNorm1d fused into the kernel).
    fwd_bn = jax.jit(functools.partial(linear_classifier_forward, bn_head=True))
    out = fwd_bn(x, weight, bias)
    jax.block_until_ready(out)

    ref = _reference_forward(x, weight, bias, bn_head=True)
    assert out.shape == (B, num_labels)
    # Weights are streamed in bf16 -> compare against the f32 reference with a
    # tolerance that covers bf16 rounding of the dominant matmul operands.
    assert jnp.allclose(out, ref, atol=1e-2, rtol=1e-2), float(
        jnp.max(jnp.abs(out - ref))
    )

    # bn_head=False (nn.Identity) path.
    fwd_id = jax.jit(functools.partial(linear_classifier_forward, bn_head=False))
    out_id = fwd_id(x, weight, bias)
    jax.block_until_ready(out_id)
    ref_id = _reference_forward(x, weight, bias, bn_head=False)
    assert jnp.allclose(out_id, ref_id, atol=1e-2, rtol=1e-2), float(
        jnp.max(jnp.abs(out_id - ref_id))
    )

    print("KERNEL_OK")
</pallas_src>

<mosaic_0001>
module attributes {stable_mosaic.version = 11 : i64} {
  func.func @_linear_kernel(%arg0: i32, %arg1: i32, %arg2: i32, %arg3: memref<8x256xf32, #tpu.memory_space<vmem>>, %arg4: memref<1x256xf32, #tpu.memory_space<vmem>>, %arg5: memref<1x256xf32, #tpu.memory_space<vmem>>, %arg6: memref<256x1024xbf16, #tpu.memory_space<vmem>>, %arg7: memref<1x1024xf32, #tpu.memory_space<vmem>>, %arg8: memref<8x1024xf32, #tpu.memory_space<vmem>>) attributes {dimension_semantics = [#tpu.dimension_semantics<parallel>, #tpu.dimension_semantics<parallel>, #tpu.dimension_semantics<arbitrary>], iteration_bounds = array<i64: 1, 1, 1>, scalar_prefetch = 0 : i64, scratch_operands = 0 : i64, tpu.core_type = #tpu.core_type<tc>, window_params = [{transform_indices = @transform_0, window_bounds = array<i64: 8, 256>}, {transform_indices = @transform_1, window_bounds = array<i64: 1, 256>}, {transform_indices = @transform_2, window_bounds = array<i64: 1, 256>}, {transform_indices = @transform_3, window_bounds = array<i64: 256, 1024>}, {transform_indices = @transform_4, window_bounds = array<i64: 1, 1024>}, {transform_indices = @transform_5, window_bounds = array<i64: 8, 1024>}]} {
    %c0_i32 = arith.constant 0 : i32
    %0 = arith.cmpi eq, %arg2, %c0_i32 : i32
    %1 = arith.extui %0 : i1 to i32
    %c0_i32_0 = arith.constant 0 : i32
    %2 = arith.cmpi ne, %1, %c0_i32_0 : i32
    scf.if %2 {
      %c0_12 = arith.constant 0 : index
      %c0_13 = arith.constant 0 : index
      %16 = vector.load %arg7[%c0_12, %c0_13] : memref<1x1024xf32, #tpu.memory_space<vmem>>, vector<1x1024xf32>
      %17 = vector.shape_cast %16 : vector<1x1024xf32> to vector<1x1024xf32>
      %18 = vector.broadcast %17 : vector<1x1024xf32> to vector<8x1024xf32>
      %c0_14 = arith.constant 0 : index
      %c0_15 = arith.constant 0 : index
      %19 = vector.load %arg8[%c0_14, %c0_15] : memref<8x1024xf32, #tpu.memory_space<vmem>>, vector<8x1024xf32>
      tpu.vector_store %arg8[%c0_14, %c0_15], %18 {strides = array<i32>} : memref<8x1024xf32, #tpu.memory_space<vmem>>, vector<8x1024xf32>,
    } else {
    }
    %c0 = arith.constant 0 : index
    %c0_1 = arith.constant 0 : index
    %3 = vector.load %arg3[%c0, %c0_1] : memref<8x256xf32, #tpu.memory_space<vmem>>, vector<8x256xf32>
    %c0_2 = arith.constant 0 : index
    %c0_3 = arith.constant 0 : index
    %4 = vector.load %arg4[%c0_2, %c0_3] : memref<1x256xf32, #tpu.memory_space<vmem>>, vector<1x256xf32>
    %5 = vector.broadcast %4 : vector<1x256xf32> to vector<8x256xf32>
    %6 = arith.subf %3, %5 : vector<8x256xf32>
    %c0_4 = arith.constant 0 : index
    %c0_5 = arith.constant 0 : index
    %7 = vector.load %arg5[%c0_4, %c0_5] : memref<1x256xf32, #tpu.memory_space<vmem>>, vector<1x256xf32>
    %8 = vector.broadcast %7 : vector<1x256xf32> to vector<8x256xf32>
    %9 = arith.mulf %6, %8 : vector<8x256xf32>
    %c0_6 = arith.constant 0 : index
    %c0_7 = arith.constant 0 : index
    %10 = vector.load %arg8[%c0_6, %c0_7] : memref<8x1024xf32, #tpu.memory_space<vmem>>, vector<8x1024xf32>
    %11 = arith.truncf %9 : vector<8x256xf32> to vector<8x256xbf16>
    %c0_8 = arith.constant 0 : index
    %c0_9 = arith.constant 0 : index
    %12 = vector.load %arg6[%c0_8, %c0_9] : memref<256x1024xbf16, #tpu.memory_space<vmem>>, vector<256x1024xbf16>
    %cst = arith.constant dense<0.000000e+00> : vector<8x1024xf32>
    %13 = tpu.matmul %11, %12, %cst {dimension_numbers = #tpu.dot_dimension_numbers<[1], [0], [0], [1], [0, 0, 1, 1], [], []>} : vector<8x256xbf16>, vector<256x1024xbf16>, vector<8x1024xf32> -> vector<8x1024xf32>
    %14 = arith.addf %10, %13 : vector<8x1024xf32>
    %c0_10 = arith.constant 0 : index
    %c0_11 = arith.constant 0 : index
    %15 = vector.load %arg8[%c0_10, %c0_11] : memref<8x1024xf32, #tpu.memory_space<vmem>>, vector<8x1024xf32>
    tpu.vector_store %arg8[%c0_10, %c0_11], %14 {strides = array<i32>} : memref<8x1024xf32, #tpu.memory_space<vmem>>, vector<8x1024xf32>,
    return
  }
  func.func @transform_0(%arg0: i32, %arg1: i32, %arg2: i32) -> (i32, i32) {
    %c0_i32 = arith.constant 0 : i32
    return %arg0, %arg2 : i32, i32
  }
  func.func @transform_1(%arg0: i32, %arg1: i32, %arg2: i32) -> (i32, i32) {
    %c0_i32 = arith.constant 0 : i32
    %c0_i32_0 = arith.constant 0 : i32
    return %c0_i32, %arg2 : i32, i32
  }
  func.func @transform_2(%arg0: i32, %arg1: i32, %arg2: i32) -> (i32, i32) {
    %c0_i32 = arith.constant 0 : i32
    %c0_i32_0 = arith.constant 0 : i32
    return %c0_i32, %arg2 : i32, i32
  }
  func.func @transform_3(%arg0: i32, %arg1: i32, %arg2: i32) -> (i32, i32) {
    %c0_i32 = arith.constant 0 : i32
    return %arg2, %arg1 : i32, i32
  }
  func.func @transform_4(%arg0: i32, %arg1: i32, %arg2: i32) -> (i32, i32) {
    %c0_i32 = arith.constant 0 : i32
    %c0_i32_0 = arith.constant 0 : i32
    return %c0_i32, %arg1 : i32, i32
  }
  func.func @transform_5(%arg0: i32, %arg1: i32, %arg2: i32) -> (i32, i32) {
    %c0_i32 = arith.constant 0 : i32
    return %arg0, %arg1 : i32, i32
  }
}

</mosaic_0001>

<bundles_post_ra>
// kernel: linear_classifier_forward.1
= control target key start
LH: loop header
LB: loop body
LE: loop exit
PB: predicated region body
PF: predicated region fallthrough
CT: control target
= control target key end

     0   :  { %v26_v32 = vlaneseq  ;;  %s1687_s3 = inlined_call_operand.vmem [shape: bf16[256,1024], index: 3, kind: input, shape index: {}]   ;;  %s1688_s0 = inlined_call_operand.vmem [shape: f32[8,256], index: 0, kind: input, shape index: {}]   ;;  %s1689_s1 = inlined_call_operand.vmem [shape: f32[1,256], index: 1, kind: input, shape index: {}]   ;;  %s1690_s2 = inlined_call_operand.vmem [shape: f32[1,256], index: 2, kind: input, shape index: {}]   ;;  %s1691_s4 = inlined_call_operand.vmem [shape: f32[1,1024], index: 4, kind: input, shape index: {}]   ;;  %s1692_s5 = inlined_call_operand.vmem [shape: f32[8,1024], index: 5, kind: output, shape index: {}]  }
   0x1   :  { %v114_v0 = vld [vmem:[%s1687_s3] sm:$0xff]  ;;  %v115_v2 = vld [vmem:[%s1687_s3 + $0x8] sm:$0xff] }
   0x2   :  { %v118_v1 = vld [vmem:[%s1687_s3 + $0x20] sm:$0xff]  ;;  %v119_v4 = vld [vmem:[%s1687_s3 + $0x28] sm:$0xff]  ;;  %v1290_v41 = vshrl.u32 %v26_v32, 7 }
   0x3   :  { %v1067_v3 = vcombine.high %v114_v0, %v118_v1  ;;  %v1066_v5 = vcombine.low %v114_v0, %v118_v1  ;;  %v122_v6 = vld [vmem:[%s1687_s3 + $0x40] sm:$0xff]  ;;  %v1069_v8 = vcombine.high %v115_v2, %v119_v4  ;;  %v1068_v9 = vcombine.low %v115_v2, %v119_v4  ;;  %v123_v11 = vld [vmem:[%s1687_s3 + $0x48] sm:$0xff] }
   0x4   :  { %v126_v7 = vld [vmem:[%s1687_s3 + $0x60] sm:$0xff]  ;;  %v127_v12 = vld [vmem:[%s1687_s3 + $0x68] sm:$0xff]  ;;  %v1305_v50 = vsub.s32 1, %v1290_v41 }
   0x5   :  { %v1075_v10 = vcombine.high %v122_v6, %v126_v7  ;;  %v130_v13 = vld [vmem:[%s1687_s3 + $0x80] sm:$0xff]  ;;  %882 = vmatprep.subr.bf16.mxu0 %v1067_v3  ;;  %v1077_v14 = vcombine.high %v123_v11, %v127_v12  ;;  %v131_v16 = vld [vmem:[%s1687_s3 + $0x88] sm:$0xff]  ;;  %923 = vmatprep.subr.bf16.mxu1 %v1069_v8  ;;  %v1074_v18 = vcombine.low %v122_v6, %v126_v7 }
   0x6   :  { %v134_v15 = vld [vmem:[%s1687_s3 + $0xa0] sm:$0xff]  ;;  %v135_v17 = vld [vmem:[%s1687_s3 + $0xa8] sm:$0xff]  ;;  %883 = vmatpush1.bf16.msra.mxu0 %v1066_v5  ;;  %924 = vmatpush1.bf16.msra.mxu1 %v1068_v9  ;;  %v1076_v19 = vcombine.low %v123_v11, %v127_v12 }
   0x7   :  { %884 = vmatprep.subr.bf16.mxu0 %v1075_v10  ;;  %v1083_v20 = vcombine.high %v130_v13, %v134_v15  ;;  %925 = vmatprep.subr.bf16.mxu1 %v1077_v14  ;;  %v1085_v21 = vcombine.high %v131_v16, %v135_v17  ;;  %v138_v22 = vld [vmem:[%s1687_s3 + $0xc0] sm:$0xff]  ;;  %v139_v24 = vld [vmem:[%s1687_s3 + $0xc8] sm:$0xff]  ;;  %v1082_v26 = vcombine.low %v130_v13, %v134_v15 }
   0x8   :  { %v142_v23 = vld [vmem:[%s1687_s3 + $0xe0] sm:$0xff]  ;;  %v143_v25 = vld [vmem:[%s1687_s3 + $0xe8] sm:$0xff]  ;;  %v1084_v27 = vcombine.low %v131_v16, %v135_v17 }
   0x9   :  { %v1091_v28 = vcombine.high %v138_v22, %v142_v23  ;;  %v1093_v29 = vcombine.high %v139_v24, %v143_v25  ;;  %v146_v30 = vld [vmem:[%s1687_s3 + $0x100] sm:$0xff]  ;;  %v147_v33 = vld [vmem:[%s1687_s3 + $0x108] sm:$0xff]  ;;  %v1090_v35 = vcombine.low %v138_v22, %v142_v23  ;;  %v1092_v36 = vcombine.low %v139_v24, %v143_v25 }
   0xa   :  { %885 = vmatpush1.bf16.msra.mxu0 %v1074_v18  ;;  %926 = vmatpush1.bf16.msra.mxu1 %v1076_v19  ;;  %v150_v31 = vld [vmem:[%s1687_s3 + $0x120] sm:$0xff]  ;;  %v151_v34 = vld [vmem:[%s1687_s3 + $0x128] sm:$0xff] }
   0xb   :  { %886 = vmatprep.subr.bf16.mxu0 %v1083_v20  ;;  %927 = vmatprep.subr.bf16.mxu1 %v1085_v21  ;;  %v1099_v37 = vcombine.high %v146_v30, %v150_v31  ;;  %v1101_v38 = vcombine.high %v147_v33, %v151_v34  ;;  %v154_v39 = vld [vmem:[%s1687_s3 + $0x140] sm:$0xff]  ;;  %v155_v42 = vld [vmem:[%s1687_s3 + $0x148] sm:$0xff]  ;;  %v1098_v44 = vcombine.low %v146_v30, %v150_v31 }
   0xc   :  { %v158_v40 = vld [vmem:[%s1687_s3 + $0x160] sm:$0xff]  ;;  %v159_v43 = vld [vmem:[%s1687_s3 + $0x168] sm:$0xff]  ;;  %v1100_v45 = vcombine.low %v147_v33, %v151_v34 }
   0xd   :  { %v1107_v46 = vcombine.high %v154_v39, %v158_v40  ;;  %v1109_v47 = vcombine.high %v155_v42, %v159_v43  ;;  %v162_v48 = vld [vmem:[%s1687_s3 + $0x180] sm:$0xff]  ;;  %v163_v51 = vld [vmem:[%s1687_s3 + $0x188] sm:$0xff]  ;;  %v1106_v53 = vcombine.low %v154_v39, %v158_v40  ;;  %v1108_v54 = vcombine.low %v155_v42, %v159_v43 }
   0xe   :  { %887 = vmatpush1.bf16.msra.mxu0 %v1082_v26  ;;  %928 = vmatpush1.bf16.msra.mxu1 %v1084_v27  ;;  %v166_v49 = vld [vmem:[%s1687_s3 + $0x1a0] sm:$0xff]  ;;  %v167_v52 = vld [vmem:[%s1687_s3 + $0x1a8] sm:$0xff] }
   0xf   :  { %888 = vmatprep.subr.bf16.mxu0 %v1091_v28  ;;  %929 = vmatprep.subr.bf16.mxu1 %v1093_v29  ;;  %v1115_v55 = vcombine.high %v162_v48, %v166_v49  ;;  %v75_v56 = vld [vmem:[%s1688_s0 + $0x8] sm:$0xff]  ;;  %v1319_v57 = vld [vmem:[%s1689_s1] sm:$0x3]  ;;  %v1117_v58 = vcombine.high %v163_v51, %v167_v52  ;;  %v1114_v2 = vcombine.low %v162_v48, %v166_v49 }
  0x10   :  { %v170_v59 = vld [vmem:[%s1687_s3 + $0x1c0] sm:$0xff]  ;;  %v85_v61 = vrot.slane %v1319_v57, %v1305_v50  ;;  %v171_v63 = vld [vmem:[%s1687_s3 + $0x1c8] sm:$0xff]  ;;  %v1116_v4 = vcombine.low %v163_v51, %v167_v52 }
  0x11   :  { %v174_v60 = vld [vmem:[%s1687_s3 + $0x1e0] sm:$0xff]  ;;  %v175_v0 = vld [vmem:[%s1687_s3 + $0x1e8] sm:$0xff] }
  0x12   :  { %889 = vmatpush1.bf16.msra.mxu0 %v1090_v35  ;;  %930 = vmatpush1.bf16.msra.mxu1 %v1092_v36  ;;  %v1332_v62 = vld [vmem:[%s1690_s2] sm:$0x3]  ;;  %v89_v3 = vsub.f32 %v75_v56, %v85_v61  ;;  %v1123_v5 = vcombine.high %v170_v59, %v174_v60  ;;  %v1125_v6 = vcombine.high %v171_v63, %v175_v0  ;;  %v179_v10 = vld [vmem:[%s1687_s3 + $0x208] sm:$0xff] }
  0x13   :  { %890 = vmatprep.subr.bf16.mxu0 %v1099_v37  ;;  %931 = vmatprep.subr.bf16.mxu1 %v1101_v38  ;;  %v99_v1 = vrot.slane %v1332_v62, %v1305_v50  ;;  %v178_v7 = vld [vmem:[%s1687_s3 + $0x200] sm:$0xff]  ;;  %v183_v11 = vld [vmem:[%s1687_s3 + $0x228] sm:$0xff]  ;;  %v1122_v12 = vcombine.low %v170_v59, %v174_v60  ;;  %v1124_v14 = vcombine.low %v171_v63, %v175_v0 }
  0x14   :  { %v182_v8 = vld [vmem:[%s1687_s3 + $0x220] sm:$0xff]  ;;  %v1133_v16 = vcombine.high %v179_v10, %v183_v11  ;;  %v187_v19 = vld [vmem:[%s1687_s3 + $0x248] sm:$0xff]  ;;  %v1132_v22 = vcombine.low %v179_v10, %v183_v11 }
  0x15   :  { %v103_v9 = vmul.f32 %v99_v1, %v89_v3  ;;  %v1131_v15 = vcombine.high %v178_v7, %v182_v8  ;;  %v186_v17 = vld [vmem:[%s1687_s3 + $0x240] sm:$0xff]  ;;  %v191_v20 = vld [vmem:[%s1687_s3 + $0x268] sm:$0xff]  ;;  %v1130_v21 = vcombine.low %v178_v7, %v182_v8 }
  0x16   :  { %891 = vmatpush1.bf16.msra.mxu0 %v1098_v44  ;;  %932 = vmatpush1.bf16.msra.mxu1 %v1100_v45  ;;  %v190_v18 = vld [vmem:[%s1687_s3 + $0x260] sm:$0xff]  ;;  %v1141_v24 = vcombine.high %v187_v19, %v191_v20  ;;  %v195_v27 = vld [vmem:[%s1687_s3 + $0x288] sm:$0xff]  ;;  %v1140_v30 = vcombine.low %v187_v19, %v191_v20  ;;  %v120_v19 = vld [vmem:[%s1687_s3 + $0x30] sm:$0xff] }
  0x17   :  { %892 = vmatprep.subr.bf16.mxu0 %v1107_v46  ;;  %933 = vmatprep.subr.bf16.mxu1 %v1109_v47  ;;  %v1354_v13 = vpack.c.bf16 %v103_v9, %v103_v9  ;;  %v1139_v23 = vcombine.high %v186_v17, %v190_v18  ;;  %v194_v25 = vld [vmem:[%s1687_s3 + $0x280] sm:$0xff]  ;;  %v199_v28 = vld [vmem:[%s1687_s3 + $0x2a8] sm:$0xff]  ;;  %v1138_v29 = vcombine.low %v186_v17, %v190_v18  ;;  %v116_v18 = vld [vmem:[%s1687_s3 + $0x10] sm:$0xff] }
  0x18   :  { %v198_v26 = vld [vmem:[%s1687_s3 + $0x2a0] sm:$0xff]  ;;  %v1149_v32 = vcombine.high %v195_v27, %v199_v28  ;;  %v203_v35 = vld [vmem:[%s1687_s3 + $0x2c8] sm:$0xff]  ;;  %v1148_v38 = vcombine.low %v195_v27, %v199_v28  ;;  %v128_v27 = vld [vmem:[%s1687_s3 + $0x70] sm:$0xff] }
  0x19   :  { %914 = vmatprep.mubr.bf16.mxu0 %v1354_v13  ;;  %955 = vmatprep.mubr.bf16.mxu1 %v1354_v13  ;;  %v1147_v31 = vcombine.high %v194_v25, %v198_v26  ;;  %v202_v33 = vld [vmem:[%s1687_s3 + $0x2c0] sm:$0xff]  ;;  %v207_v36 = vld [vmem:[%s1687_s3 + $0x2e8] sm:$0xff]  ;;  %v1146_v37 = vcombine.low %v194_v25, %v198_v26  ;;  %v124_v26 = vld [vmem:[%s1687_s3 + $0x50] sm:$0xff] }
  0x1a   :  { %893 = vmatpush1.bf16.msra.mxu0 %v1106_v53  ;;  %934 = vmatpush1.bf16.msra.mxu1 %v1108_v54  ;;  %v206_v34 = vld [vmem:[%s1687_s3 + $0x2e0] sm:$0xff]  ;;  %v1157_v40 = vcombine.high %v203_v35, %v207_v36  ;;  %v211_v44 = vld [vmem:[%s1687_s3 + $0x308] sm:$0xff]  ;;  %v1156_v47 = vcombine.low %v203_v35, %v207_v36  ;;  %v132_v35 = vld [vmem:[%s1687_s3 + $0x90] sm:$0xff] }
  0x1b   :  { %894 = vmatprep.subr.bf16.mxu0 %v1115_v55  ;;  %935 = vmatprep.subr.bf16.mxu1 %v1117_v58  ;;  %v1155_v39 = vcombine.high %v202_v33, %v206_v34  ;;  %v210_v42 = vld [vmem:[%s1687_s3 + $0x300] sm:$0xff]  ;;  %v215_v45 = vld [vmem:[%s1687_s3 + $0x328] sm:$0xff]  ;;  %v1154_v46 = vcombine.low %v202_v33, %v206_v34  ;;  %v1419_v55 = vsub.s32 0, %v1290_v41  ;;  %v1079_v33 = vcombine.high %v124_v26, %v128_v27  ;;  %v136_v36 = vld [vmem:[%s1687_s3 + $0xb0] sm:$0xff] }
  0x1c   :  { %v214_v43 = vld [vmem:[%s1687_s3 + $0x320] sm:$0xff]  ;;  %v1165_v49 = vcombine.high %v211_v44, %v215_v45  ;;  %v219_v53 = vld [vmem:[%s1687_s3 + $0x348] sm:$0xff]  ;;  %v1164_v58 = vcombine.low %v211_v44, %v215_v45  ;;  %v140_v44 = vld [vmem:[%s1687_s3 + $0xd0] sm:$0xff] }
  0x1d   :  { %v1163_v48 = vcombine.high %v210_v42, %v214_v43  ;;  %v218_v51 = vld [vmem:[%s1687_s3 + $0x340] sm:$0xff]  ;;  %v223_v54 = vld [vmem:[%s1687_s3 + $0x368] sm:$0xff]  ;;  %v1162_v56 = vcombine.low %v210_v42, %v214_v43  ;;  %v1087_v42 = vcombine.high %v132_v35, %v136_v36  ;;  %v144_v45 = vld [vmem:[%s1687_s3 + $0xf0] sm:$0xff] }
  0x1e   :  { %895 = vmatpush1.bf16.msra.mxu0 %v1114_v2  ;;  %936 = vmatpush1.bf16.msra.mxu1 %v1116_v4  ;;  %v222_v52 = vld [vmem:[%s1687_s3 + $0x360] sm:$0xff]  ;;  %v1173_v60 = vcombine.high %v219_v53, %v223_v54  ;;  %v227_v0 = vld [vmem:[%s1687_s3 + $0x388] sm:$0xff]  ;;  %v81_v2 = vrot.slane %v1319_v57, %v1419_v55 }
  0x1f   :  { %896 = vmatprep.subr.bf16.mxu0 %v1123_v5  ;;  %937 = vmatprep.subr.bf16.mxu1 %v1125_v6  ;;  %v1171_v59 = vcombine.high %v218_v51, %v222_v52  ;;  %v226_v61 = vld [vmem:[%s1687_s3 + $0x380] sm:$0xff]  ;;  %v231_v1 = vld [vmem:[%s1687_s3 + $0x3a8] sm:$0xff]  ;;  %v1170_v3 = vcombine.low %v218_v51, %v222_v52  ;;  %v1172_v5 = vcombine.low %v219_v53, %v223_v54  ;;  %v148_v53 = vld [vmem:[%s1687_s3 + $0x110] sm:$0xff] }
  0x20   :  { %v230_v63 = vld [vmem:[%s1687_s3 + $0x3a0] sm:$0xff]  ;;  %v1181_v7 = vcombine.high %v227_v0, %v231_v1  ;;  %v235_v9 = vld [vmem:[%s1687_s3 + $0x3c8] sm:$0xff]  ;;  %v1095_v51 = vcombine.high %v140_v44, %v144_v45  ;;  %v152_v54 = vld [vmem:[%s1687_s3 + $0x130] sm:$0xff] }
  0x21   :  { %v74_v4 = vld [vmem:[%s1688_s0] sm:$0xff]  ;;  %v1179_v6 = vcombine.high %v226_v61, %v230_v63  ;;  %v239_v10 = vld [vmem:[%s1687_s3 + $0x3e8] sm:$0xff] }
  0x22   :  { %897 = vmatpush1.bf16.msra.mxu0 %v1122_v12  ;;  %938 = vmatpush1.bf16.msra.mxu1 %v1124_v14  ;;  %v234_v8 = vld [vmem:[%s1687_s3 + $0x3c0] sm:$0xff]  ;;  %v88_v11 = vsub.f32 %v74_v4, %v81_v2  ;;  %v95_v12 = vrot.slane %v1332_v62, %v1419_v55  ;;  %v1178_v14 = vcombine.low %v226_v61, %v230_v63  ;;  %v117_v62 = vld [vmem:[%s1687_s3 + $0x18] sm:$0xff]  ;;  %v156_v63 = vld [vmem:[%s1687_s3 + $0x150] sm:$0xff] }
  0x23   :  { %898 = vmatprep.subr.bf16.mxu0 %v1131_v15  ;;  %939 = vmatprep.subr.bf16.mxu1 %v1133_v16  ;;  %v238_v57 = vld [vmem:[%s1687_s3 + $0x3e0] sm:$0xff]  ;;  %v1180_v15 = vcombine.low %v227_v0, %v231_v1  ;;  %v1189_v17 = vcombine.high %v235_v9, %v239_v10  ;;  %v160_v0 = vld [vmem:[%s1687_s3 + $0x170] sm:$0xff]  ;;  %v157_v1 = vld [vmem:[%s1687_s3 + $0x158] sm:$0xff] }
  0x24   :  { %v1187_v16 = vcombine.high %v234_v8, %v238_v57  ;;  %v102_v20 = vmul.f32 %v95_v12, %v88_v11  ;;  %v161_v2 = vld [vmem:[%s1687_s3 + $0x178] sm:$0xff] }
  0x25   :  { %v1112_v11 = vcombine.low %v157_v1, %v161_v2 }
  0x26   :  { %899 = vmatpush1.bf16.msra.mxu0 %v1130_v21  ;;  %940 = vmatpush1.bf16.msra.mxu1 %v1132_v22  ;;  %v121_v21 = vld [vmem:[%s1687_s3 + $0x38] sm:$0xff]  ;;  %v1186_v22 = vcombine.low %v234_v8, %v238_v57  ;;  %v1470_v28 = vpack.c.bf16 %v102_v20, %v102_v20  ;;  %v168_v8 = vld [vmem:[%s1687_s3 + $0x1b0] sm:$0xff] }
  0x27   :  { %900 = vmatprep.subr.bf16.mxu0 %v1139_v23  ;;  %941 = vmatprep.subr.bf16.mxu1 %v1141_v24  ;;  %v1188_v23 = vcombine.low %v235_v9, %v239_v10  ;;  %v1071_v24 = vcombine.high %v116_v18, %v120_v19  ;;  %v1073_v25 = vcombine.high %v117_v62, %v121_v21  ;;  %v165_v57 = vld [vmem:[%s1687_s3 + $0x198] sm:$0xff] }
  0x28   :  { %v169_v9 = vld [vmem:[%s1687_s3 + $0x1b8] sm:$0xff]  ;;  %v1110_v10 = vcombine.low %v156_v63, %v160_v0 }
  0x29   :  { %v1120_v20 = vcombine.low %v165_v57, %v169_v9 }
  0x2a   :  { %901 = vmatpush1.bf16.msra.mxu0 %v1138_v29  ;;  %942 = vmatpush1.bf16.msra.mxu1 %v1140_v30  ;;  %v125_v29 = vld [vmem:[%s1687_s3 + $0x58] sm:$0xff] }
  0x2b   :  { %902 = vmatprep.subr.bf16.mxu0 %v1147_v31  ;;  %943 = vmatprep.subr.bf16.mxu1 %v1149_v32  ;;  %v129_v30 = vld [vmem:[%s1687_s3 + $0x78] sm:$0xff]  ;;  %v1070_v31 = vcombine.low %v116_v18, %v120_v19  ;;  %v1072_v32 = vcombine.low %v117_v62, %v121_v21 }
  0x2c   :  { %v1081_v34 = vcombine.high %v125_v29, %v129_v30  ;;  %v177_v18 = vld [vmem:[%s1687_s3 + $0x1f8] sm:$0xff] }
  0x2e   :  { %903 = vmatpush1.bf16.msra.mxu0 %v1146_v37  ;;  %944 = vmatpush1.bf16.msra.mxu1 %v1148_v38  ;;  %v133_v37 = vld [vmem:[%s1687_s3 + $0x98] sm:$0xff] }
  0x2f   :  { %904 = vmatprep.subr.bf16.mxu0 %v1155_v39  ;;  %945 = vmatprep.subr.bf16.mxu1 %v1157_v40  ;;  %v137_v38 = vld [vmem:[%s1687_s3 + $0xb8] sm:$0xff]  ;;  %v1078_v39 = vcombine.low %v124_v26, %v128_v27  ;;  %v1080_v40 = vcombine.low %v125_v29, %v129_v30 }
  0x30   :  { %v1089_v43 = vcombine.high %v133_v37, %v137_v38 }
  0x32   :  { %905 = vmatpush1.bf16.msra.mxu0 %v1154_v46  ;;  %946 = vmatpush1.bf16.msra.mxu1 %v1156_v47  ;;  %v141_v46 = vld [vmem:[%s1687_s3 + $0xd8] sm:$0xff] }
  0x33   :  { %906 = vmatprep.subr.bf16.mxu0 %v1163_v48  ;;  %947 = vmatprep.subr.bf16.mxu1 %v1165_v49  ;;  %v145_v47 = vld [vmem:[%s1687_s3 + $0xf8] sm:$0xff]  ;;  %v1086_v48 = vcombine.low %v132_v35, %v136_v36  ;;  %v1088_v49 = vcombine.low %v133_v37, %v137_v38 }
  0x34   :  { %v1097_v52 = vcombine.high %v141_v46, %v145_v47 }
  0x36   :  { %907 = vmatpush1.bf16.msra.mxu0 %v1162_v56  ;;  %948 = vmatpush1.bf16.msra.mxu1 %v1164_v58  ;;  %v153_v56 = vld [vmem:[%s1687_s3 + $0x138] sm:$0xff]  ;;  %v1094_v58 = vcombine.low %v140_v44, %v144_v45 }
  0x37   :  { %908 = vmatprep.subr.bf16.mxu0 %v1171_v59  ;;  %949 = vmatprep.subr.bf16.mxu1 %v1173_v60  ;;  %v1096_v59 = vcombine.low %v141_v46, %v145_v47  ;;  %v1103_v60 = vcombine.high %v148_v53, %v152_v54 }
  0x3a   :  { %909 = vmatpush1.bf16.msra.mxu0 %v1170_v3  ;;  %950 = vmatpush1.bf16.msra.mxu1 %v1172_v5  ;;  %v1102_v3 = vcombine.low %v148_v53, %v152_v54  ;;  %v1111_v5 = vcombine.high %v156_v63, %v160_v0 }
  0x3b   :  { %910 = vmatprep.subr.bf16.mxu0 %v1179_v6  ;;  %951 = vmatprep.subr.bf16.mxu1 %v1181_v7  ;;  %v1113_v6 = vcombine.high %v157_v1, %v161_v2  ;;  %v164_v7 = vld [vmem:[%s1687_s3 + $0x190] sm:$0xff] }
  0x3c   :  { %v1119_v12 = vcombine.high %v164_v7, %v168_v8  ;;  %v1118_v19 = vcombine.low %v164_v7, %v168_v8 }
  0x3e   :  { %911 = vmatpush1.bf16.msra.mxu0 %v1178_v14  ;;  %952 = vmatpush1.bf16.msra.mxu1 %v1180_v15  ;;  %v1121_v14 = vcombine.high %v165_v57, %v169_v9  ;;  %v172_v15 = vld [vmem:[%s1687_s3 + $0x1d0] sm:$0xff] }
  0x3f   :  { %912 = vmatprep.subr.bf16.mxu0 %v1187_v16  ;;  %953 = vmatprep.subr.bf16.mxu1 %v1189_v17  ;;  %v176_v16 = vld [vmem:[%s1687_s3 + $0x1f0] sm:$0xff]  ;;  %v173_v17 = vld [vmem:[%s1687_s3 + $0x1d8] sm:$0xff] }
  0x40   :  { %v1127_v62 = vcombine.high %v172_v15, %v176_v16  ;;  %v1129_v21 = vcombine.high %v173_v17, %v177_v18  ;;  %v1126_v26 = vcombine.low %v172_v15, %v176_v16  ;;  %v1128_v27 = vcombine.low %v173_v17, %v177_v18 }
  0x42   :  { %913 = vmatpush1.bf16.msra.mxu0 %v1186_v22  ;;  %954 = vmatpush1.bf16.msra.mxu1 %v1188_v23  ;;  %v180_v22 = vld [vmem:[%s1687_s3 + $0x210] sm:$0xff] }
  0x43   :  { %964 = vmatprep.subr.bf16.mxu0 %v1071_v24  ;;  %1005 = vmatprep.subr.bf16.mxu1 %v1073_v25  ;;  %v184_v23 = vld [vmem:[%s1687_s3 + $0x230] sm:$0xff]  ;;  %v181_v24 = vld [vmem:[%s1687_s3 + $0x218] sm:$0xff] }
  0x44   :  { %v185_v25 = vld [vmem:[%s1687_s3 + $0x238] sm:$0xff]  ;;  %v1135_v29 = vcombine.high %v180_v22, %v184_v23  ;;  %v1134_v35 = vcombine.low %v180_v22, %v184_v23 }
  0x45   :  { %915 = vmatmul.mubr.bf16.vlgmr.msra.gmra.mrb[0].mxu0 %v1470_v28  ;;  %956 = vmatmul.mubr.bf16.vlgmr.msra.gmra.mrb[0].mxu1 %v1470_v28  ;;  %v1137_v30 = vcombine.high %v181_v24, %v185_v25  ;;  %v1136_v36 = vcombine.low %v181_v24, %v185_v25 }
  0x46   :  { %965 = vmatpush1.bf16.msra.mxu0 %v1070_v31  ;;  %1006 = vmatpush1.bf16.msra.mxu1 %v1072_v32  ;;  %v188_v31 = vld [vmem:[%s1687_s3 + $0x250] sm:$0xff] }
  0x47   :  { %966 = vmatprep.subr.bf16.mxu0 %v1079_v33  ;;  %1007 = vmatprep.subr.bf16.mxu1 %v1081_v34  ;;  %v192_v32 = vld [vmem:[%s1687_s3 + $0x270] sm:$0xff]  ;;  %v189_v33 = vld [vmem:[%s1687_s3 + $0x258] sm:$0xff] }
  0x48   :  { %996 = vmatprep.mubr.bf16.mxu0 %v1354_v13  ;;  %1037 = vmatprep.mubr.bf16.mxu1 %v1354_v13  ;;  %v149_v13 = vld [vmem:[%s1687_s3 + $0x118] sm:$0xff]  ;;  %v1143_v37 = vcombine.high %v188_v31, %v192_v32  ;;  %v1142_v44 = vcombine.low %v188_v31, %v192_v32  ;;  %v40_v31 = vsub.s32 3, %v1290_v41 }
  0x49   :  { %v1105_v61 = vcombine.high %v149_v13, %v153_v56  ;;  %v1104_v4 = vcombine.low %v149_v13, %v153_v56  ;;  %v193_v34 = vld [vmem:[%s1687_s3 + $0x278] sm:$0xff] }
  0x4a   :  { %967 = vmatpush1.bf16.msra.mxu0 %v1078_v39  ;;  %1008 = vmatpush1.bf16.msra.mxu1 %v1080_v40  ;;  %v1145_v38 = vcombine.high %v189_v33, %v193_v34  ;;  %v196_v39 = vld [vmem:[%s1687_s3 + $0x290] sm:$0xff]  ;;  %v1144_v45 = vcombine.low %v189_v33, %v193_v34 }
  0x4b   :  { %968 = vmatprep.subr.bf16.mxu0 %v1087_v42  ;;  %1009 = vmatprep.subr.bf16.mxu1 %v1089_v43  ;;  %v200_v40 = vld [vmem:[%s1687_s3 + $0x2b0] sm:$0xff]  ;;  %v197_v42 = vld [vmem:[%s1687_s3 + $0x298] sm:$0xff] }
  0x4c   :  { %v201_v43 = vld [vmem:[%s1687_s3 + $0x2b8] sm:$0xff]  ;;  %v1151_v46 = vcombine.high %v196_v39, %v200_v40  ;;  %v1150_v53 = vcombine.low %v196_v39, %v200_v40 }
  0x4d   :  { %v1153_v47 = vcombine.high %v197_v42, %v201_v43  ;;  %v1152_v54 = vcombine.low %v197_v42, %v201_v43 }
  0x4e   :  { %969 = vmatpush1.bf16.msra.mxu0 %v1086_v48  ;;  %1010 = vmatpush1.bf16.msra.mxu1 %v1088_v49  ;;  %v204_v48 = vld [vmem:[%s1687_s3 + $0x2d0] sm:$0xff] }
  0x4f   :  { %970 = vmatprep.subr.bf16.mxu0 %v1095_v51  ;;  %1011 = vmatprep.subr.bf16.mxu1 %v1097_v52  ;;  %v208_v49 = vld [vmem:[%s1687_s3 + $0x2f0] sm:$0xff]  ;;  %v205_v51 = vld [vmem:[%s1687_s3 + $0x2d8] sm:$0xff] }
  0x50   :  { %v209_v52 = vld [vmem:[%s1687_s3 + $0x2f8] sm:$0xff]  ;;  %v1159_v13 = vcombine.high %v204_v48, %v208_v49  ;;  %v1158_v63 = vcombine.low %v204_v48, %v208_v49  ;;  %v48_v48 = vsub.s32 5, %v1290_v41  ;;  %v56_v49 = vsub.s32 7, %v1290_v41 }
  0x51   :  { %v1161_v56 = vcombine.high %v205_v51, %v209_v52  ;;  %v1160_v0 = vcombine.low %v205_v51, %v209_v52 }
  0x52   :  { %971 = vmatpush1.bf16.msra.mxu0 %v1094_v58  ;;  %1012 = vmatpush1.bf16.msra.mxu1 %v1096_v59  ;;  %v212_v58 = vld [vmem:[%s1687_s3 + $0x310] sm:$0xff] }
  0x53   :  { %972 = vmatprep.subr.bf16.mxu0 %v1103_v60  ;;  %1013 = vmatprep.subr.bf16.mxu1 %v1105_v61  ;;  %v216_v59 = vld [vmem:[%s1687_s3 + $0x330] sm:$0xff]  ;;  %v213_v60 = vld [vmem:[%s1687_s3 + $0x318] sm:$0xff] }
  0x54   :  { %v217_v61 = vld [vmem:[%s1687_s3 + $0x338] sm:$0xff]  ;;  %v1167_v1 = vcombine.high %v212_v58, %v216_v59  ;;  %v1166_v7 = vcombine.low %v212_v58, %v216_v59 }
  0x55   :  { %v1169_v2 = vcombine.high %v213_v60, %v217_v61  ;;  %v1168_v8 = vcombine.low %v213_v60, %v217_v61 }
  0x56   :  { %973 = vmatpush1.bf16.msra.mxu0 %v1102_v3  ;;  %1014 = vmatpush1.bf16.msra.mxu1 %v1104_v4  ;;  %v220_v3 = vld [vmem:[%s1687_s3 + $0x350] sm:$0xff] }
  0x57   :  { %974 = vmatprep.subr.bf16.mxu0 %v1111_v5  ;;  %1015 = vmatprep.subr.bf16.mxu1 %v1113_v6  ;;  %v224_v4 = vld [vmem:[%s1687_s3 + $0x370] sm:$0xff]  ;;  %v221_v5 = vld [vmem:[%s1687_s3 + $0x358] sm:$0xff] }
  0x58   :  { %v225_v6 = vld [vmem:[%s1687_s3 + $0x378] sm:$0xff]  ;;  %v1175_v57 = vcombine.high %v220_v3, %v224_v4  ;;  %v1174_v15 = vcombine.low %v220_v3, %v224_v4 }
  0x59   :  { %v1177_v9 = vcombine.high %v221_v5, %v225_v6  ;;  %v1176_v16 = vcombine.low %v221_v5, %v225_v6 }
  0x5a   :  { %975 = vmatpush1.bf16.msra.mxu0 %v1110_v10  ;;  %1016 = vmatpush1.bf16.msra.mxu1 %v1112_v11  ;;  %v228_v10 = vld [vmem:[%s1687_s3 + $0x390] sm:$0xff] }
  0x5b   :  { %976 = vmatprep.subr.bf16.mxu0 %v1119_v12  ;;  %1017 = vmatprep.subr.bf16.mxu1 %v1121_v14  ;;  %v232_v11 = vld [vmem:[%s1687_s3 + $0x3b0] sm:$0xff]  ;;  %v229_v12 = vld [vmem:[%s1687_s3 + $0x398] sm:$0xff] }
  0x5c   :  { %v233_v14 = vld [vmem:[%s1687_s3 + $0x3b8] sm:$0xff]  ;;  %v1183_v17 = vcombine.high %v228_v10, %v232_v11  ;;  %v1182_v22 = vcombine.low %v228_v10, %v232_v11 }
  0x5d   :  { %v1185_v18 = vcombine.high %v229_v12, %v233_v14  ;;  %v1184_v23 = vcombine.low %v229_v12, %v233_v14 }
  0x5e   :  { %977 = vmatpush1.bf16.msra.mxu0 %v1118_v19  ;;  %1018 = vmatpush1.bf16.msra.mxu1 %v1120_v20  ;;  %v236_v19 = vld [vmem:[%s1687_s3 + $0x3d0] sm:$0xff] }
  0x5f   :  { %978 = vmatprep.subr.bf16.mxu0 %v1127_v62  ;;  %1019 = vmatprep.subr.bf16.mxu1 %v1129_v21  ;;  %v240_v20 = vld [vmem:[%s1687_s3 + $0x3f0] sm:$0xff]  ;;  %v237_v62 = vld [vmem:[%s1687_s3 + $0x3d8] sm:$0xff] }
  0x60   :  { %v241_v21 = vld [vmem:[%s1687_s3 + $0x3f8] sm:$0xff]  ;;  %v1191_v24 = vcombine.high %v236_v19, %v240_v20 }
  0x61   :  { %v1193_v25 = vcombine.high %v237_v62, %v241_v21 }
  0x62   :  { %979 = vmatpush1.bf16.msra.mxu0 %v1126_v26  ;;  %1020 = vmatpush1.bf16.msra.mxu1 %v1128_v27  ;;  %v1190_v26 = vcombine.low %v236_v19, %v240_v20  ;;  %v1192_v27 = vcombine.low %v237_v62, %v241_v21 }
  0x63   :  { %980 = vmatprep.subr.bf16.mxu0 %v1135_v29  ;;  %1021 = vmatprep.subr.bf16.mxu1 %v1137_v30  ;;  %v24_v29 = vld [vmem:[%s1691_s4] sm:$0xff]  ;;  %v36_v30 = vsub.s32 2, %v1290_v41 }
  0x64   :  { %v29_v32 = vrot.slane %v24_v29, %v1419_v55  ;;  %v33_v34 = vrot.slane %v24_v29, %v1305_v50  ;;  %v44_v55 = vsub.s32 4, %v1290_v41 }
  0x65   :  { %v37_v33 = vrot.slane %v24_v29, %v36_v30 }
  0x66   :  { %981 = vmatpush1.bf16.msra.mxu0 %v1134_v35  ;;  %1022 = vmatpush1.bf16.msra.mxu1 %v1136_v36  ;;  %v41_v35 = vrot.slane %v24_v29, %v40_v31  ;;  %v45_v51 = vrot.slane %v24_v29, %v44_v55 }
  0x67   :  { %982 = vmatprep.subr.bf16.mxu0 %v1143_v37  ;;  %1023 = vmatprep.subr.bf16.mxu1 %v1145_v38 }
  0x6a   :  { %983 = vmatpush1.bf16.msra.mxu0 %v1142_v44  ;;  %1024 = vmatpush1.bf16.msra.mxu1 %v1144_v45 }
  0x6b   :  { %984 = vmatprep.subr.bf16.mxu0 %v1151_v46  ;;  %1025 = vmatprep.subr.bf16.mxu1 %v1153_v47  ;;  %v52_v47 = vsub.s32 6, %v1290_v41 }
  0x6d   :  { %v53_v52 = vrot.slane %v24_v29, %v52_v47 }
  0x6e   :  { %985 = vmatpush1.bf16.msra.mxu0 %v1150_v53  ;;  %1026 = vmatpush1.bf16.msra.mxu1 %v1152_v54  ;;  %v49_v53 = vrot.slane %v24_v29, %v48_v48  ;;  %v57_v54 = vrot.slane %v24_v29, %v56_v49 }
  0x6f   :  { %986 = vmatprep.subr.bf16.mxu0 %v1159_v13  ;;  %1027 = vmatprep.subr.bf16.mxu1 %v1161_v56 }
  0x72   :  { %987 = vmatpush1.bf16.msra.mxu0 %v1158_v63  ;;  %1028 = vmatpush1.bf16.msra.mxu1 %v1160_v0 }
  0x73   :  { %988 = vmatprep.subr.bf16.mxu0 %v1167_v1  ;;  %1029 = vmatprep.subr.bf16.mxu1 %v1169_v2 }
  0x76   :  { %989 = vmatpush1.bf16.msra.mxu0 %v1166_v7  ;;  %1030 = vmatpush1.bf16.msra.mxu1 %v1168_v8 }
  0x77   :  { %990 = vmatprep.subr.bf16.mxu0 %v1175_v57  ;;  %1031 = vmatprep.subr.bf16.mxu1 %v1177_v9 }
  0x7a   :  { %991 = vmatpush1.bf16.msra.mxu0 %v1174_v15  ;;  %1032 = vmatpush1.bf16.msra.mxu1 %v1176_v16 }
  0x7b   :  { %992 = vmatprep.subr.bf16.mxu0 %v1183_v17  ;;  %1033 = vmatprep.subr.bf16.mxu1 %v1185_v18 }
  0x7e   :  { %993 = vmatpush1.bf16.msra.mxu0 %v1182_v22  ;;  %1034 = vmatpush1.bf16.msra.mxu1 %v1184_v23 }
  0x7f   :  { %994 = vmatprep.subr.bf16.mxu0 %v1191_v24  ;;  %1035 = vmatprep.subr.bf16.mxu1 %v1193_v25 }
  0x82   :  { %995 = vmatpush1.bf16.msra.mxu0 %v1190_v26  ;;  %1036 = vmatpush1.bf16.msra.mxu1 %v1192_v27 }
  0x85   :  { %997 = vmatmul.mubr.bf16.vlgmr.msra.gmra.mrb[4].mxu0 %v1470_v28  ;;  %1038 = vmatmul.mubr.bf16.vlgmr.msra.gmra.mrb[4].mxu1 %v1470_v28 }
 0x118   :  { %v916_v36 = vpop.f32.mrb[0].mxu0  ;;  %v957_v38 = vpop.f32.mrb[0].mxu1 }
 0x119   :  { %v1046_v37 = vadd.f32 %v916_v36, %v29_v32  ;;  %v918_v39 = vpop.f32.mrb[1].mxu0  ;;  %v1048_v40 = vadd.f32 %v957_v38, %v37_v33  ;;  %v959_v42 = vpop.f32.mrb[1].mxu1 }
 0x11a   :  { %v1047_v28 = vadd.f32 %v918_v39, %v33_v34  ;;  %v920_v43 = vpop.f32.mrb[2].mxu0  ;;  %v1049_v44 = vadd.f32 %v959_v42, %v41_v35  ;;  %v961_v45 = vpop.f32.mrb[2].mxu1 }
 0x11b   :  { %1054 = vst [vmem:[%s1692_s5] sm:$0xff] %v1046_v37  ;;  %v921_v46 = vpop.f32.mrb[3].mxu0  ;;  %1056 = vst [vmem:[%s1692_s5 + $0x10] sm:$0xff] %v1048_v40  ;;  %v962_v50 = vpop.f32.mrb[3].mxu1 }
 0x11c   :  { %1055 = vst [vmem:[%s1692_s5 + $0x8] sm:$0xff] %v1047_v28  ;;  %1057 = vst [vmem:[%s1692_s5 + $0x18] sm:$0xff] %v1049_v44 }
 0x158   :  { %v998_v13 = vpop.f32.mrb[4].mxu0  ;;  %v1039_v58 = vpop.f32.mrb[4].mxu1 }
 0x159   :  { %v1050_v56 = vadd.f32 %v998_v13, %v45_v51  ;;  %v1000_v59 = vpop.f32.mrb[5].mxu0  ;;  %v1052_v60 = vadd.f32 %v1039_v58, %v53_v52  ;;  %v1041_v63 = vpop.f32.mrb[5].mxu1 }
 0x15a   :  { %v1051_v61 = vadd.f32 %v1000_v59, %v49_v53  ;;  %v1002_v0 = vpop.f32.mrb[6].mxu0  ;;  %v1053_v1 = vadd.f32 %v1041_v63, %v57_v54  ;;  %v1043_v2 = vpop.f32.mrb[6].mxu1 }
 0x15b   :  { %1058 = vst [vmem:[%s1692_s5 + $0x20] sm:$0xff] %v1050_v56  ;;  %v1003_v3 = vpop.f32.mrb[7].mxu0  ;;  %1060 = vst [vmem:[%s1692_s5 + $0x30] sm:$0xff] %v1052_v60  ;;  %v1044_v41 = vpop.f32.mrb[7].mxu1 }
 0x15c   :  { %1059 = vst [vmem:[%s1692_s5 + $0x28] sm:$0xff] %v1051_v61  ;;  %1061 = vst [vmem:[%s1692_s5 + $0x38] sm:$0xff] %v1053_v1 }

</bundles_post_ra>
